<compile_context>
chip_gen: v6e
topology: v6e:2x2x1
jax: 0.10.0
libtpu: 0.0.40
codegen_flags: <defaults>
</compile_context>

<pallas_src>
import functools

import jax
import jax.numpy as jnp
from jax.experimental import pallas as pl
from jax.experimental.pallas import tpu as pltpu


def _round_up(x, m):
    return ((x + m - 1) // m) * m


# ----------------------------- kernels -------------------------------------


def _lz_kernel_single_k(x_ref, w_ref, b_ref, ls_ref, o_ref, *, log_scale_factor):
    # Single K block: dot + bias + exp-scale fused, written straight out.
    acc = jnp.dot(x_ref[...], w_ref[...], preferred_element_type=jnp.float32)
    acc = acc + b_ref[...]                                  # broadcast (1, tn)
    scale = jnp.exp(ls_ref[...] * log_scale_factor)         # EUP exp, (1, tn)
    o_ref[...] = (acc * scale).astype(o_ref.dtype)


def _lz_kernel_multi_k(x_ref, w_ref, b_ref, ls_ref, o_ref, acc_ref, *,
                       log_scale_factor):
    # K tiled (innermost grid axis): f32 VMEM accumulator, finalize on last k.
    k = pl.program_id(2)

    @pl.when(k == 0)
    def _():
        acc_ref[...] = jnp.zeros_like(acc_ref)

    acc_ref[...] += jnp.dot(x_ref[...], w_ref[...],
                            preferred_element_type=jnp.float32)

    @pl.when(k == pl.num_programs(2) - 1)
    def _():
        acc = acc_ref[...] + b_ref[...]
        scale = jnp.exp(ls_ref[...] * log_scale_factor)
        o_ref[...] = (acc * scale).astype(o_ref.dtype)


# ----------------------------- wrapper --------------------------------------


def linear_zeros_forward(x, weight, bias, log_scale, log_scale_factor=3):
    """x: (B, in_size); weight: (out_size, in_size); bias: (out_size,);
    log_scale: (1, out_size, 1, 1).  Returns (B, out_size, 1, 1)."""
    B, in_size = x.shape
    out_size = weight.shape[0]

    # ---- K tiling: collapse to a single block whenever it fits ------------
    TK_CAP = 2048
    if in_size <= TK_CAP:
        tk, Kp = in_size, in_size                 # full-extent block, no K pad
    else:
        cands = (2048, 1536, 1024, 768, 512, 384, 256, 128)
        tk = min(cands, key=lambda c: (_round_up(in_size, c), -c))
        Kp = _round_up(in_size, tk)
    k_steps = Kp // tk

    # ---- M tiling: single block (weight streamed once) when x slab is small
    SINGLE_M_MAX_ROWS = 1024
    SINGLE_M_MAX_BYTES = 4 << 20                  # x M-slab bytes per K block
    if B <= SINGLE_M_MAX_ROWS and B * tk * 4 <= SINGLE_M_MAX_BYTES:
        tm, Mp = B, B                             # full-extent block, no M pad
    else:
        cands = (512, 384, 256, 128)
        tm = min(cands, key=lambda c: (_round_up(B, c), -c))
        Mp = _round_up(B, tm)
    m_blocks = Mp // tm

    # ---- N tiling: minimize padded Np, prefer >=2 parallel blocks (v7x) ----
    if out_size <= 128:
        tn, Np = out_size, out_size               # full-extent block, no N pad
    else:
        cands = (512, 384, 256, 128)
        best_np = min(_round_up(out_size, c) for c in cands)
        min_c = [c for c in cands if _round_up(out_size, c) == best_np]
        multi = [c for c in min_c if m_blocks * (best_np // c) >= 2]
        tn = max(multi) if multi else max(min_c)
        Np = best_np
    n_blocks = Np // tn

    # ---- padding (only what the chosen tiles require; zero-K-pad is exact) -
    xp = x
    if (Mp, Kp) != (B, in_size):
        xp = jnp.pad(x, ((0, Mp - B), (0, Kp - in_size)))
    wt = weight.T                                  # (in_size, out_size), once
    if (Kp, Np) != (in_size, out_size):
        wt = jnp.pad(wt, ((0, Kp - in_size), (0, Np - out_size)))
    b2 = bias.reshape(1, out_size)
    ls2 = log_scale.reshape(1, out_size)
    if Np != out_size:
        b2 = jnp.pad(b2, ((0, 0), (0, Np - out_size)))
        ls2 = jnp.pad(ls2, ((0, 0), (0, Np - out_size)))

    lsf = float(log_scale_factor)

    if k_steps == 1:
        kernel = functools.partial(_lz_kernel_single_k, log_scale_factor=lsf)
        grid = (m_blocks, n_blocks)
        in_specs = [
            pl.BlockSpec((tm, tk), lambda i, j: (i, 0)),   # x (N-resident)
            pl.BlockSpec((tk, tn), lambda i, j: (0, j)),   # weight^T slab
            pl.BlockSpec((1, tn), lambda i, j: (0, j)),    # bias
            pl.BlockSpec((1, tn), lambda i, j: (0, j)),    # log_scale
        ]
        out_specs = pl.BlockSpec((tm, tn), lambda i, j: (i, j))
        scratch = []
        dims = ("parallel", "parallel")
    else:
        kernel = functools.partial(_lz_kernel_multi_k, log_scale_factor=lsf)
        grid = (m_blocks, n_blocks, k_steps)               # K innermost
        in_specs = [
            pl.BlockSpec((tm, tk), lambda i, j, k: (i, k)),
            pl.BlockSpec((tk, tn), lambda i, j, k: (k, j)),
            pl.BlockSpec((1, tn), lambda i, j, k: (0, j)),
            pl.BlockSpec((1, tn), lambda i, j, k: (0, j)),
        ]
        out_specs = pl.BlockSpec((tm, tn), lambda i, j, k: (i, j))
        scratch = [pltpu.VMEM((tm, tn), jnp.float32)]
        dims = ("parallel", "parallel", "arbitrary")

    out_p = pl.pallas_call(
        kernel,
        out_shape=jax.ShapeDtypeStruct((Mp, Np), x.dtype),
        grid_spec=pltpu.PrefetchScalarGridSpec(
            num_scalar_prefetch=0,
            grid=grid,
            in_specs=in_specs,
            out_specs=out_specs,
            scratch_shapes=scratch,
        ),
        compiler_params=pltpu.CompilerParams(
            dimension_semantics=dims,
            # Worst-case working set under the caps above is ~22 MiB
            # (double-buffered x/w/out + f32 acc), safe on v7x's 64 MiB VMEM.
            vmem_limit_bytes=64 * 1024 * 1024),
    )(xp, wt, b2, ls2)

    out2d = out_p if (Mp, Np) == (B, out_size) else out_p[:B, :out_size]
    # PyTorch .view(B, out_size, 1, 1)
    return out2d.reshape(B, out_size, 1, 1)


def linear_zeros_reference(x, weight, bias, log_scale, log_scale_factor=3):
    out = x @ weight.T + bias
    out = out.reshape(x.shape[0], weight.shape[0], 1, 1)
    return out * jnp.exp(log_scale * log_scale_factor)


if __name__ == "__main__":
    B, in_size, out_size = 2, 32, 16
    log_scale_factor = 3

    key = jax.random.PRNGKey(0)
    x = jax.random.normal(key, (B, in_size), dtype=jnp.float32)

    # Parameters initialized exactly as LinearZeros.__init__: all zeros.
    weight = jnp.zeros((out_size, in_size), dtype=jnp.float32)
    bias = jnp.zeros((out_size,), dtype=jnp.float32)
    log_scale = jnp.zeros((1, out_size, 1, 1), dtype=jnp.float32)

    out = linear_zeros_forward(x, weight, bias, log_scale, log_scale_factor)
    out = jax.block_until_ready(out)
    ref = linear_zeros_reference(x, weight, bias, log_scale, log_scale_factor)
    assert out.shape == (B, out_size, 1, 1)
    assert jnp.allclose(out, ref, atol=1e-6), "zero-init mismatch"

    # Non-trivial parameters: exercise matmul + bias + exp-scale path.
    k1, k2, k3 = jax.random.split(jax.random.PRNGKey(1), 3)
    weight_nz = 0.1 * jax.random.normal(k1, (out_size, in_size), dtype=jnp.float32)
    bias_nz = 0.1 * jax.random.normal(k2, (out_size,), dtype=jnp.float32)
    log_scale_nz = 0.1 * jax.random.normal(k3, (1, out_size, 1, 1), dtype=jnp.float32)

    out_nz = linear_zeros_forward(x, weight_nz, bias_nz, log_scale_nz, log_scale_factor)
    out_nz = jax.block_until_ready(out_nz)
    ref_nz = linear_zeros_reference(x, weight_nz, bias_nz, log_scale_nz, log_scale_factor)
    assert jnp.allclose(out_nz, ref_nz, rtol=1e-5, atol=1e-5), "nonzero-param mismatch"

    # Larger shape: exercises the multi-N-block parallel grid with a single
    # resident x block, weight streamed once, and the fused (no-scratch)
    # single-K epilogue path.
    B2, in2, out2 = 384, 1024, 320
    kx, kw, kb, kl = jax.random.split(jax.random.PRNGKey(2), 4)
    x_big = jax.random.normal(kx, (B2, in2), dtype=jnp.float32)
    w_big = 0.02 * jax.random.normal(kw, (out2, in2), dtype=jnp.float32)
    b_big = 0.1 * jax.random.normal(kb, (out2,), dtype=jnp.float32)
    ls_big = 0.05 * jax.random.normal(kl, (1, out2, 1, 1), dtype=jnp.float32)

    out_big = linear_zeros_forward(x_big, w_big, b_big, ls_big, log_scale_factor)
    out_big = jax.block_until_ready(out_big)
    ref_big = linear_zeros_reference(x_big, w_big, b_big, ls_big, log_scale_factor)
    assert out_big.shape == (B2, out2, 1, 1)
    assert jnp.allclose(out_big, ref_big, rtol=2e-5, atol=2e-5), "multi-tile mismatch"

    # Very large K: exercises the K-tiled accumulator kernel path.
    B3, in3, out3 = 64, 4096, 256
    kx3, kw3, kb3, kl3 = jax.random.split(jax.random.PRNGKey(3), 4)
    x_k = jax.random.normal(kx3, (B3, in3), dtype=jnp.float32)
    w_k = 0.01 * jax.random.normal(kw3, (out3, in3), dtype=jnp.float32)
    b_k = 0.1 * jax.random.normal(kb3, (out3,), dtype=jnp.float32)
    ls_k = 0.05 * jax.random.normal(kl3, (1, out3, 1, 1), dtype=jnp.float32)

    out_k = linear_zeros_forward(x_k, w_k, b_k, ls_k, log_scale_factor)
    out_k = jax.block_until_ready(out_k)
    ref_k = linear_zeros_reference(x_k, w_k, b_k, ls_k, log_scale_factor)
    assert jnp.allclose(out_k, ref_k, rtol=2e-5, atol=2e-5), "K-tiled mismatch"

    print("KERNEL_OK")
</pallas_src>

<mosaic_0001>
module attributes {stable_mosaic.version = 11 : i64} {
  func.func @_lz_kernel_single_k(%arg0: i32, %arg1: i32, %arg2: memref<2x32xf32, #tpu.memory_space<vmem>>, %arg3: memref<32x16xf32, #tpu.memory_space<vmem>>, %arg4: memref<1x16xf32, #tpu.memory_space<vmem>>, %arg5: memref<1x16xf32, #tpu.memory_space<vmem>>, %arg6: memref<2x16xf32, #tpu.memory_space<vmem>>) attributes {dimension_semantics = [#tpu.dimension_semantics<parallel>, #tpu.dimension_semantics<parallel>], iteration_bounds = array<i64: 1, 1>, scalar_prefetch = 0 : i64, scratch_operands = 0 : i64, tpu.core_type = #tpu.core_type<tc>, window_params = [{transform_indices = @transform_0, window_bounds = array<i64: 2, 32>}, {transform_indices = @transform_1, window_bounds = array<i64: 32, 16>}, {transform_indices = @transform_2, window_bounds = array<i64: 1, 16>}, {transform_indices = @transform_3, window_bounds = array<i64: 1, 16>}, {transform_indices = @transform_4, window_bounds = array<i64: 2, 16>}]} {
    %c0 = arith.constant 0 : index
    %c0_0 = arith.constant 0 : index
    %0 = vector.load %arg2[%c0, %c0_0] : memref<2x32xf32, #tpu.memory_space<vmem>>, vector<2x32xf32>
    %c0_1 = arith.constant 0 : index
    %c0_2 = arith.constant 0 : index
    %1 = vector.load %arg3[%c0_1, %c0_2] : memref<32x16xf32, #tpu.memory_space<vmem>>, vector<32x16xf32>
    %cst = arith.constant dense<0.000000e+00> : vector<2x16xf32>
    %2 = tpu.matmul %0, %1, %cst {dimension_numbers = #tpu.dot_dimension_numbers<[1], [0], [0], [1], [0, 0, 1, 1], [], []>} : vector<2x32xf32>, vector<32x16xf32>, vector<2x16xf32> -> vector<2x16xf32>
    %c0_3 = arith.constant 0 : index
    %c0_4 = arith.constant 0 : index
    %3 = vector.load %arg4[%c0_3, %c0_4] : memref<1x16xf32, #tpu.memory_space<vmem>>, vector<1x16xf32>
    %4 = vector.broadcast %3 : vector<1x16xf32> to vector<2x16xf32>
    %5 = arith.addf %2, %4 : vector<2x16xf32>
    %c0_5 = arith.constant 0 : index
    %c0_6 = arith.constant 0 : index
    %6 = vector.load %arg5[%c0_5, %c0_6] : memref<1x16xf32, #tpu.memory_space<vmem>>, vector<1x16xf32>
    %cst_7 = arith.constant 3.000000e+00 : f32
    %7 = vector.broadcast %cst_7 : f32 to vector<1x16xf32>
    %8 = arith.mulf %6, %7 : vector<1x16xf32>
    %9 = math.exp %8 : vector<1x16xf32>
    %10 = vector.broadcast %9 : vector<1x16xf32> to vector<2x16xf32>
    %11 = arith.mulf %5, %10 : vector<2x16xf32>
    %c0_8 = arith.constant 0 : index
    %c0_9 = arith.constant 0 : index
    %12 = vector.load %arg6[%c0_8, %c0_9] : memref<2x16xf32, #tpu.memory_space<vmem>>, vector<2x16xf32>
    tpu.vector_store %arg6[%c0_8, %c0_9], %11 {strides = array<i32>} : memref<2x16xf32, #tpu.memory_space<vmem>>, vector<2x16xf32>,
    return
  }
  func.func @transform_0(%arg0: i32, %arg1: i32) -> (i32, i32) {
    %c0_i32 = arith.constant 0 : i32
    %c0_i32_0 = arith.constant 0 : i32
    return %arg0, %c0_i32 : i32, i32
  }
  func.func @transform_1(%arg0: i32, %arg1: i32) -> (i32, i32) {
    %c0_i32 = arith.constant 0 : i32
    %c0_i32_0 = arith.constant 0 : i32
    return %c0_i32, %arg1 : i32, i32
  }
  func.func @transform_2(%arg0: i32, %arg1: i32) -> (i32, i32) {
    %c0_i32 = arith.constant 0 : i32
    %c0_i32_0 = arith.constant 0 : i32
    return %c0_i32, %arg1 : i32, i32
  }
  func.func @transform_3(%arg0: i32, %arg1: i32) -> (i32, i32) {
    %c0_i32 = arith.constant 0 : i32
    %c0_i32_0 = arith.constant 0 : i32
    return %c0_i32, %arg1 : i32, i32
  }
  func.func @transform_4(%arg0: i32, %arg1: i32) -> (i32, i32) {
    %c0_i32 = arith.constant 0 : i32
    return %arg0, %arg1 : i32, i32
  }
}

</mosaic_0001>

<bundles_post_ra>
// kernel: tpu_custom_call.1
= control target key start
LH: loop header
LB: loop body
LE: loop exit
PB: predicated region body
PF: predicated region fallthrough
CT: control target
= control target key end

     0   :  { %v176_v1 = vmov 0.0   ;;  %vm177_vm0 = vmmov 0   ;;  %s228_s0 = inlined_call_operand.vmem [shape: f32[2,32], index: 0, kind: input, shape index: {}]   ;;  %s229_s1 = inlined_call_operand.vmem [shape: f32[32,16], index: 1, kind: input, shape index: {}]   ;;  %s230_s2 = inlined_call_operand.vmem [shape: f32[1,16], index: 2, kind: input, shape index: {}]   ;;  %s231_s3 = inlined_call_operand.vmem [shape: f32[1,16], index: 3, kind: input, shape index: {}]   ;;  %s232_s4 = inlined_call_operand.hbm [shape: f32[2,16], index: 4, kind: output, shape index: {}]  }
   0x1   :  { %v22_v0 = vld [vmem:[%s229_s1 + $0x18] sm:$0xff]  ;;  %138 = vmatprep.subr.mxu0 %v176_v1  ;;  %v21_v2 = vld [vmem:[%s229_s1 + $0x10] sm:$0xff]  ;;  %146 = vmatprep.mubr.msk.f32.mxu0 %vm177_vm0, %v176_v1 }
   0x2   :  { %139 = vmatpush3.msra.mxu0 %v22_v0 }
   0x3   :  { %9 = vsyncpa [#allocation3], 0  ;;  %140 = vmatprep.subr.mxu0 %v176_v1  ;;  %v20_v3 = vld [vmem:[%s229_s1 + $0x8] sm:$0xff]  ;;  %v19_v4 = vld [vmem:[%s229_s1] sm:$0xff]  ;;  %vm30_vm1 = vcmask 261120   ;;  %v109_v9 = vlaneseq  ;;  %vm115_vm2 = vcmask 123904  }
   0x4   :  { %141 = vmatpush3.msra.mxu0 %v21_v2  ;;  %v18_v5 = vld [vmem:[%s228_s0] sm:$0x3]  ;;  %s178_s0 = smov [#allocation2]  }
   0x5   :  { %142 = vmatprep.subr.mxu0 %v176_v1  ;;  %v104_v6 = vld [vmem:[%s231_s3] sm:$0x1]  ;;  %v110_v10 = vshrl.u32 %v109_v9, 7  ;;  %s123_s28 = sshll.u32 %s178_s0, 4  ;;  %s124_s28 = int_to_ptr.vmem [resolvable:$true] %s123_s28 }
   0x6   :  { %143 = vmatpush3.msra.mxu0 %v20_v3  ;;  %v105_v7 = vmul.f32 3.0, %v104_v6  ;;  %v131_v13 = vld [vmem:[%s230_s2] ss:$0 sm:$0xff]  ;;  %s154_s3 = scalar_lea.vmem %s124_s28, 32  ;;  %p159_p1 = scmp.lt.s32.totalorder %s124_s28, %s124_s28 }
   0x7   :  { %144 = vmatprep.subr.mxu0 %v176_v1  ;;  %v111_v11 = vsub.s32 0, %v110_v10  ;;  %p155_p0 = scmp.ne.s32.totalorder %s124_s28, %s154_s3  ;;  %p160_p2 = scmp.lt.s32.totalorder %s154_s3, %s154_s3 }
   0x8   :  { %145 = vmatpush3.msra.mxu0 %v19_v4  ;;  %v106_v8 = vmul.f32 1.442695, %v105_v7 }
   0x9   :  { %147 = vmatmul.mubr.msk.f32.vlgmr.msra.gmra.mxu0 %vm30_vm1, %v18_v5  ;;  %p161_p3 = por %p160_p2, %p159_p1 }
   0xa   :  { %152 = vpow2.f32 %v106_v8 }
   0xb   :  { %p162_p4 = pnand %p161_p3, %p155_p0 }
  0x17   :  { %v153_v12 = vpop.eup %152 }
  0x18   :  { %v112_v14 = vrot.slane %v153_v12, %v111_v11 }
  0xc9   :  { %v100_v15 = vpop.f32.mrf.mxu0 }
  0xca   :  { %v101_v16 = vadd.f32 %v131_v13, %v100_v15 }
  0xcb   :  { %v148_v17 = vpop.f32.mrf.mxu0 }
  0xcc   :  { %v114_v18 = vmul.f32 %v112_v14, %v101_v16 }
  0xce   :  { %116 = vst.msk [vmem:[#allocation2] sm:$0x3] %vm115_vm2, %v114_v18 }
  0xcf   :  { %165 = shalt.err (!%p162_p4)
}
  0xd0   :  { %126 = dma.vmem_to_hbm [thread:$0]  %s124_s28, 32, %s232_s4, [#allocation3]  }
  0xd1   :  { %174 = dma.done.wait [#allocation3], 32  }
  0xd2   :  { %175 = vsyncadd [#allocation3], 4294967264 }
  0xd3   :  { %130 = vsyncpa [#allocation3], 1 }

</bundles_post_ra>
